<compile_context>
chip_gen: v7x
topology: tpu7x:2x2x1
jax: 0.10.0
libtpu: 0.0.40
codegen_flags: <defaults>
</compile_context>

<pallas_src>
import functools

import jax
import jax.numpy as jnp
from jax.experimental import pallas as pl
from jax.experimental.pallas import tpu as pltpu

_LANES = 128
_SUBLANES = 8


def _bce_kernel(pred_ref, target_ref, partial_ref, *, total, needs_mask):
    k = pl.program_id(0)
    tile_r, lanes = pred_ref.shape

    # Cast in-kernel (inputs may arrive as bf16; HBM traffic stays narrow).
    p = pred_ref[...].astype(jnp.float32)
    t = target_ref[...].astype(jnp.float32)

    # PyTorch BCELoss clamps each log term at -100.
    log_p = jnp.maximum(jnp.log(p), jnp.float32(-100.0))
    log_1mp = jnp.maximum(jnp.log1p(-p), jnp.float32(-100.0))
    elem = -(t * log_p + (1.0 - t) * log_1mp)

    def _reduce(e):
        # (tile_r, lanes) -> (8, lanes): splitting the sublane-major leading
        # dim keeps whole (8, 128) vreg tiles, so this is pure VPU adds.
        return jnp.sum(e.reshape(tile_r // _SUBLANES, _SUBLANES, lanes), axis=0)

    if needs_mask:
        last = pl.num_programs(0) - 1

        # Only the last tile can contain tail padding or an out-of-bounds
        # partial block; keep the masking cost off the hot path.
        @pl.when(k != last)
        def _():
            partial_ref[...] = _reduce(elem)

        @pl.when(k == last)
        def _():
            r_ids = jax.lax.broadcasted_iota(jnp.int32, (tile_r, lanes), 0)
            l_ids = jax.lax.broadcasted_iota(jnp.int32, (tile_r, lanes), 1)
            # Flat element index (int32 is fine for < 2^31 elements).
            idx = (k * tile_r + r_ids) * lanes + l_ids
            partial_ref[...] = _reduce(jnp.where(idx < total, elem, 0.0))
    else:
        partial_ref[...] = _reduce(elem)


def bce_loss(pred, target, *, tile_rows=8192):
    """Pallas implementation of BCELoss.forward(pred, target) -> scalar."""
    assert pred.shape == target.shape
    total = int(pred.size)
    lanes = _LANES

    rows = -(-total // lanes)
    padded = rows * lanes

    # Flatten to a lane-dense layout (free reshape for contiguous inputs).
    p_flat = pred.reshape(-1)
    t_flat = target.reshape(-1)
    if padded != total:
        # TODO(synk): avoid this full-copy pad (only a <128-element logical
        # tail) by streaming 1-D blocks when total % 128 != 0.
        p_flat = jnp.pad(p_flat, (0, padded - total))
        t_flat = jnp.pad(t_flat, (0, padded - total))

    p2 = p_flat.reshape(rows, lanes)
    t2 = t_flat.reshape(rows, lanes)

    # Block: (tile_r, 128), tile_r a multiple of 8, capped so each f32 input
    # block is ~4 MiB (2 inputs x 2 pipeline buffers ~= 16 MiB) -- fits every
    # generation's VMEM once the scoped limit is raised below, with headroom
    # under v7x's 64 MiB physical VMEM.
    tile_r = min(tile_rows, ((rows + _SUBLANES - 1) // _SUBLANES) * _SUBLANES)
    num_tiles = -(-rows // tile_r)
    needs_mask = (rows % tile_r != 0) or (padded != total)

    kernel = functools.partial(_bce_kernel, total=total, needs_mask=needs_mask)

    partials = pl.pallas_call(
        kernel,
        out_shape=jax.ShapeDtypeStruct((num_tiles, _SUBLANES, lanes), jnp.float32),
        grid_spec=pltpu.PrefetchScalarGridSpec(
            num_scalar_prefetch=0,
            grid=(num_tiles,),
            in_specs=[
                pl.BlockSpec((tile_r, lanes), lambda k: (k, 0)),
                pl.BlockSpec((tile_r, lanes), lambda k: (k, 0)),
            ],
            # None squeezes the tile axis: kernel sees a lane-dense (8, 128)
            # partial-sum block; stores are unmasked full vregs.
            out_specs=pl.BlockSpec((None, _SUBLANES, lanes), lambda k: (k, 0, 0)),
        ),
        compiler_params=pltpu.CompilerParams(
            # No cross-iteration state -> grid is embarrassingly parallel;
            # shards across both TensorCores on v7x, harmless on v5e/v6e.
            dimension_semantics=("parallel",),
            # Raise the default scoped VMEM limit (16 MiB v5e / 32 MiB v6e,v7x)
            # so the large streaming blocks double-buffer without spilling.
            vmem_limit_bytes=48 * 1024 * 1024,
        ),
    )(p2, t2)

    # Tiny final reduction (num_tiles * 1024 floats) + mean, in plain XLA.
    return jnp.sum(partials) * (1.0 / total)


def bce_loss_ref(pred, target):
    """Pure-JAX reference mirroring torch.nn.BCELoss (mean reduction)."""
    p = pred.astype(jnp.float32)
    t = target.astype(jnp.float32)
    log_p = jnp.maximum(jnp.log(p), -100.0)
    log_1mp = jnp.maximum(jnp.log1p(-p), -100.0)
    return jnp.mean(-(t * log_p + (1.0 - t) * log_1mp))


if __name__ == "__main__":
    key = jax.random.PRNGKey(0)
    k1, k2 = jax.random.split(key)

    # NCHW inputs like the PyTorch module: probabilities in (0,1), binary targets.
    N, C, H, W = 2, 4, 16, 16
    pred = jax.nn.sigmoid(jax.random.normal(k1, (N, C, H, W), dtype=jnp.float32))
    target = (jax.random.uniform(k2, (N, C, H, W)) > 0.5).astype(jnp.float32)

    out = bce_loss(pred, target)
    out = jax.block_until_ready(out)

    ref = bce_loss_ref(pred, target)
    assert jnp.allclose(out, ref, rtol=1e-5, atol=1e-5), (out, ref)

    print("KERNEL_OK")
</pallas_src>

<mosaic_0001>
module attributes {stable_mosaic.version = 11 : i64} {
  func.func @_bce_kernel(%arg0: i32, %arg1: memref<16x128xf32, #tpu.memory_space<vmem>>, %arg2: memref<16x128xf32, #tpu.memory_space<vmem>>, %arg3: memref<1x8x128xf32, #tpu.memory_space<vmem>>) attributes {dimension_semantics = [#tpu.dimension_semantics<parallel>], iteration_bounds = array<i64: 1>, scalar_prefetch = 0 : i64, scratch_operands = 0 : i64, tpu.core_type = #tpu.core_type<tc>, window_params = [{transform_indices = @transform_0, window_bounds = array<i64: 16, 128>}, {transform_indices = @transform_1, window_bounds = array<i64: 16, 128>}, {transform_indices = @transform_2, window_bounds = array<i64: 1, 8, 128>}]} {
    %c0 = arith.constant 0 : index
    %c0_0 = arith.constant 0 : index
    %0 = vector.load %arg1[%c0, %c0_0] : memref<16x128xf32, #tpu.memory_space<vmem>>, vector<16x128xf32>
    %c0_1 = arith.constant 0 : index
    %c0_2 = arith.constant 0 : index
    %1 = vector.load %arg2[%c0_1, %c0_2] : memref<16x128xf32, #tpu.memory_space<vmem>>, vector<16x128xf32>
    %2 = math.log %0 : vector<16x128xf32>
    %cst = arith.constant -1.000000e+02 : f32
    %3 = vector.broadcast %cst : f32 to vector<16x128xf32>
    %4 = arith.maximumf %2, %3 : vector<16x128xf32>
    %cst_3 = arith.constant 0.000000e+00 : f32
    %5 = vector.broadcast %cst_3 : f32 to vector<16x128xf32>
    %6 = arith.subf %5, %0 : vector<16x128xf32>
    %7 = math.log1p %6 : vector<16x128xf32>
    %cst_4 = arith.constant -1.000000e+02 : f32
    %8 = vector.broadcast %cst_4 : f32 to vector<16x128xf32>
    %9 = arith.maximumf %7, %8 : vector<16x128xf32>
    %10 = arith.mulf %1, %4 : vector<16x128xf32>
    %cst_5 = arith.constant 1.000000e+00 : f32
    %11 = vector.broadcast %cst_5 : f32 to vector<16x128xf32>
    %12 = arith.subf %11, %1 : vector<16x128xf32>
    %13 = arith.mulf %12, %9 : vector<16x128xf32>
    %14 = arith.addf %10, %13 : vector<16x128xf32>
    %cst_6 = arith.constant 0.000000e+00 : f32
    %15 = vector.broadcast %cst_6 : f32 to vector<16x128xf32>
    %16 = arith.subf %15, %14 : vector<16x128xf32>
    %17 = vector.shape_cast %16 : vector<16x128xf32> to vector<2x8x128xf32>
    %cst_7 = arith.constant dense<0.000000e+00> : vector<8x128xf32>
    %18 = vector.multi_reduction <add>, %17, %cst_7 [0] : vector<2x8x128xf32> to vector<8x128xf32>
    %c0_8 = arith.constant 0 : index
    %c0_9 = arith.constant 0 : index
    %c0_10 = arith.constant 0 : index
    %19 = vector.load %arg3[%c0_8, %c0_9, %c0_10] : memref<1x8x128xf32, #tpu.memory_space<vmem>>, vector<1x8x128xf32>
    %20 = vector.shape_cast %19 : vector<1x8x128xf32> to vector<8x128xf32>
    %21 = vector.shape_cast %18 : vector<8x128xf32> to vector<1x8x128xf32>
    tpu.vector_store %arg3[%c0_8, %c0_9, %c0_10], %21 {strides = array<i32>} : memref<1x8x128xf32, #tpu.memory_space<vmem>>, vector<1x8x128xf32>,
    return
  }
  func.func @transform_0(%arg0: i32) -> (i32, i32) {
    %c0_i32 = arith.constant 0 : i32
    %c0_i32_0 = arith.constant 0 : i32
    return %arg0, %c0_i32 : i32, i32
  }
  func.func @transform_1(%arg0: i32) -> (i32, i32) {
    %c0_i32 = arith.constant 0 : i32
    %c0_i32_0 = arith.constant 0 : i32
    return %arg0, %c0_i32 : i32, i32
  }
  func.func @transform_2(%arg0: i32) -> (i32, i32, i32) {
    %c0_i32 = arith.constant 0 : i32
    %c0_i32_0 = arith.constant 0 : i32
    %c0_i32_1 = arith.constant 0 : i32
    return %arg0, %c0_i32, %c0_i32_0 : i32, i32, i32
  }
}

</mosaic_0001>

<bundles_post_ra>
// kernel: tpu_custom_call.1
= control target key start
LH: loop header
LB: loop body
LE: loop exit
PB: predicated region body
PF: predicated region fallthrough
CT: control target
= control target key end

     0   :  { %7 = vsyncpa [#allocation3], 0  ;;  %s241_s0 = inlined_call_operand.hbm [shape: f32[16,128], index: 0, kind: input, shape index: {}]   ;;  %s242_s1 = inlined_call_operand.hbm [shape: f32[16,128], index: 1, kind: input, shape index: {}]   ;;  %s243_s2 = inlined_call_operand.hbm [shape: f32[1,8,128], index: 2, kind: output, shape index: {}]  }
   0x1   :  { %8 = vsyncpa [#allocation6], 0 }
   0x2   :  { %9 = vsyncpa [#allocation4], 0  ;;  %s185_s9 = smov [#allocation2]   ;;  %s113_s13 = scalar_lea.hbm %s241_s0, 256 }
   0x3   :  { %s15_s10 = sshll.u32 %s185_s9, 4  ;;  %p114_p0 = scmp.ne.s32.totalorder %s241_s0, %s113_s13  ;;  %s16_s10 = int_to_ptr.vmem [resolvable:$true] %s15_s10 }
   0x4   :  { %p117_p1 = scmp.lt.u32.totalorder %s113_s13, %s241_s0 }
   0x6   :  { %p119_p2 = pnand %p117_p1, %p114_p0 }
   0x8   :  { %122 = shalt.err (!%p119_p2)
}
   0x9   :  { %s123_s18 = scalar_lea.vmem %s16_s10, 256  ;;  %p128_p4 = scmp.lt.s32.totalorder %s16_s10, %s16_s10 }
   0xa   :  { %p124_p3 = scmp.ne.s32.totalorder %s16_s10, %s123_s18  ;;  %p129_p5 = scmp.lt.s32.totalorder %s123_s18, %s123_s18 }
   0xc   :  { %p130_p6 = por %p129_p5, %p128_p4 }
   0xe   :  { %p131_p7 = pnand %p130_p6, %p124_p3 }
  0x10   :  { %134 = shalt.err (!%p131_p7)
}
  0x11   :  { %s186_s19 = smov 128   ;;  %s187_s20 = smov 8  }
  0x12   :  { %21 = dma.hbm_to_vmem [thread:$0]  %s241_s0, 256, %s16_s10, [#allocation3], %s186_s19, %s186_s19, %s187_s20  }
  0x13   :  { %s188_s23 = smov [#allocation5]   ;;  %s135_s27 = scalar_lea.hbm %s242_s1, 256 }
  0x14   :  { %s27_s24 = sshll.u32 %s188_s23, 4  ;;  %p136_p8 = scmp.ne.s32.totalorder %s242_s1, %s135_s27  ;;  %s28_s24 = int_to_ptr.vmem [resolvable:$true] %s27_s24 }
  0x15   :  { %p139_p9 = scmp.lt.u32.totalorder %s135_s27, %s242_s1 }
  0x17   :  { %p141_p10 = pnand %p139_p9, %p136_p8 }
  0x19   :  { %144 = shalt.err (!%p141_p10)
}
  0x1a   :  { %s145_s4 = scalar_lea.vmem %s28_s24, 256  ;;  %p150_p12 = scmp.lt.s32.totalorder %s28_s24, %s28_s24 }
  0x1b   :  { %p146_p11 = scmp.ne.s32.totalorder %s28_s24, %s145_s4  ;;  %p151_p13 = scmp.lt.s32.totalorder %s145_s4, %s145_s4 }
  0x1d   :  { %p152_p0 = por %p151_p13, %p150_p12 }
  0x1f   :  { %p153_p1 = pnand %p152_p0, %p146_p11 }
  0x21   :  { %156 = shalt.err (!%p153_p1)
}
  0x22   :  { %33 = dma.hbm_to_vmem [thread:$0]  %s242_s1, 256, %s28_s24, [#allocation6], %s186_s19, %s186_s19, %s187_s20  }
  0x23   :  { %179 = dma.done.wait [#allocation3], 256  }
  0x24   :  { %180 = vsyncadd [#allocation3], 4294967040 }
  0x25   :  { %181 = dma.done.wait [#allocation6], 256  }
  0x26   :  { %182 = vsyncadd [#allocation6], 4294967040  ;;  %v40_v0 = vld [vmem:[#allocation2] sm:$0xff]  ;;  %v41_v1 = vld [vmem:[#allocation2 + $0x8] sm:$0xff]  ;;  %s189_s1 = smov [#allocation7]  }
  0x27   :  { %105 = vlog2.f32 %v40_v0  ;;  %v50_v2 = vsub.f32 0.0, %v40_v0  ;;  %v51_v3 = vsub.f32 0.0, %v41_v1  ;;  %v42_v16 = vld [vmem:[#allocation5] sm:$0xff]  ;;  %v43_v19 = vld [vmem:[#allocation5 + $0x8] sm:$0xff]  ;;  %s90_s6 = sshll.u32 %s189_s1, 4  ;;  %s91_s6 = int_to_ptr.vmem [resolvable:$true] %s90_s6 }
  0x28   :  { %107 = vlog2.f32 %v41_v1  ;;  %v74_v26 = vsub.f32 1.0, %v42_v16  ;;  %v75_v28 = vsub.f32 1.0, %v43_v19  ;;  %s157_s7 = scalar_lea.vmem %s91_s6, 128  ;;  %p162_p3 = scmp.lt.s32.totalorder %s91_s6, %s91_s6 }
  0x29   :  { %v52_v4 = vadd.f32 1.0, %v50_v2  ;;  %v61_v5 = vadd.f32 1.0, %v51_v3  ;;  %v55_v6 = vmul.f32 -0.5, %v50_v2  ;;  %v64_v7 = vmul.f32 -0.5, %v51_v3  ;;  %p158_p2 = scmp.ne.s32.totalorder %s91_s6, %s157_s7  ;;  %p163_p4 = scmp.lt.s32.totalorder %s157_s7, %s157_s7 }
  0x2a   :  { %v58_v10 = vand.u32 2147483647, %v50_v2  ;;  %v67_v14 = vand.u32 2147483647, %v51_v3 }
  0x2b   :  { %109 = vlog2.f32 %v52_v4  ;;  %v56_v8 = vadd.f32 1.0, %v55_v6  ;;  %v65_v11 = vadd.f32 1.0, %v64_v7  ;;  %p164_p5 = por %p163_p4, %p162_p3 }
  0x2c   :  { %111 = vlog2.f32 %v61_v5  ;;  %vm59_vm0 = vcmp.lt.f32.partialorder %v58_v10, 0.0004427343  ;;  %vm68_vm1 = vcmp.lt.f32.partialorder %v67_v14, 0.0004427343 }
  0x2d   :  { %v57_v17 = vmul.f32 %v56_v8, %v50_v2  ;;  %v66_v21 = vmul.f32 %v65_v11, %v51_v3  ;;  %p165_p6 = pnand %p164_p5, %p158_p2 }
  0x31   :  { %v106_v9 = vpop.eup %105 }
  0x32   :  { %v108_v12 = vpop.eup %107  ;;  %v45_v13 = vmul.f32 0.6931472, %v106_v9 }
  0x33   :  { %v47_v15 = vmul.f32 0.6931472, %v108_v12 }
  0x34   :  { %v48_v20 = vmax.f32 %v45_v13, -100.0 }
  0x35   :  { %v110_v18 = vpop.eup %109  ;;  %v49_v23 = vmax.f32 %v47_v15, -100.0 }
  0x36   :  { %v112_v22 = vpop.eup %111  ;;  %v54_v24 = vmul.f32 0.6931472, %v110_v18  ;;  %v72_v31 = vmul.f32 %v48_v20, %v42_v16 }
  0x37   :  { %v63_v25 = vmul.f32 0.6931472, %v112_v22  ;;  %v73_v33 = vmul.f32 %v49_v23, %v43_v19 }
  0x38   :  { %v60_v27 = vsel %vm59_vm0, %v57_v17, %v54_v24 }
  0x39   :  { %v69_v29 = vsel %vm68_vm1, %v66_v21, %v63_v25  ;;  %v70_v30 = vmax.f32 %v60_v27, -100.0 }
  0x3a   :  { %v71_v32 = vmax.f32 %v69_v29, -100.0 }
  0x3b   :  { %v76_v34 = vmul.f32 %v74_v26, %v70_v30 }
  0x3c   :  { %v77_v35 = vmul.f32 %v75_v28, %v71_v32 }
  0x3d   :  { %v78_v36 = vadd.f32 %v76_v34, %v72_v31 }
  0x3e   :  { %v79_v37 = vadd.f32 %v77_v35, %v73_v33 }
  0x3f   :  { %v80_v38 = vsub.f32 0.0, %v78_v36 }
  0x40   :  { %v81_v39 = vsub.f32 0.0, %v79_v37 }
  0x42   :  { %v82_v40 = vadd.f32 %v81_v39, %v80_v38 }
  0x44   :  { %83 = vst [vmem:[#allocation7] sm:$0xff] %v82_v40 }
  0x45   :  { %168 = shalt.err (!%p165_p6)
}
  0x46   :  { %s169_s10 = scalar_lea.hbm %s243_s2, 128 }
  0x47   :  { %p170_p7 = scmp.ne.s32.totalorder %s243_s2, %s169_s10  ;;  %p173_p8 = scmp.lt.u32.totalorder %s169_s10, %s243_s2 }
  0x49   :  { %p175_p9 = pnand %p173_p8, %p170_p7 }
  0x4b   :  { %178 = shalt.err (!%p175_p9)
}
  0x4c   :  { %93 = dma.vmem_to_hbm [thread:$0]  %s91_s6, 128, %s243_s2, [#allocation4]  }
  0x4d   :  { %183 = dma.done.wait [#allocation4], 128  }
  0x4e   :  { %184 = vsyncadd [#allocation4], 4294967168 }
  0x4f   :  { %97 = vsyncpa [#allocation3], 1 }
  0x50   :  { %98 = vsyncpa [#allocation6], 1 }
  0x51   :  { %99 = vsyncpa [#allocation4], 1 }

</bundles_post_ra>
